<compile_context>
chip_gen: v6e
topology: v6e:2x2x1
jax: 0.10.0
libtpu: 0.0.40
codegen_flags: <defaults>
</compile_context>

<pallas_src>
import functools

import numpy as np

import jax
import jax.numpy as jnp
from jax.experimental import pallas as pl
from jax.experimental.pallas import tpu as pltpu

LANE = 128                   # lane width: feature/class dims padded to this (lane-dense stores)
FUSED_MAX_NODES = 1024       # all-layers-fused single-call path when padded N <= this
X_RESIDENT_BUDGET = 4 << 20  # keep X fully VMEM-resident (bf16 bytes) below this


def _round_up(x, m):
    return ((x + m - 1) // m) * m


def _pad2d(a, rows, cols):
    return jnp.pad(a, ((0, rows - a.shape[0]), (0, cols - a.shape[1])))


def _choose_tiles(n):
    """Row/contraction tile for the large-graph path.

    Large tiles (512-1024) amortize the ~0.35us fixed per-grid-step overhead, but we keep at
    least 2 row tiles so the 'parallel' row axis can split across v7x's two TensorCores.
    """
    align, target = 256, 1024
    t = (n // 2) // align * align
    return max(align, min(target, t))


# --------------------------------------------------------------------------------------------
# Large-graph path: one fused pallas_call per GCNConv layer, tiled over (rows, source nodes).
# --------------------------------------------------------------------------------------------
def _layer_kernel(a_ref, x_ref, w_ref, b_ref, o_ref, acc_ref, *,
                  activation, cout_real, tk, x_resident):
    """act((A @ X) @ W + b)  ==  act(A @ (X @ W) + b).

    Grid = (row_tiles, k_tiles). A@X partial sums accumulate into a VMEM f32 scratch across the
    k (source-node) axis; the small feature transform, bias and activation epilogue run only on
    the final k step, directly before the single lane-dense store.
    """
    k = pl.program_id(1)

    @pl.when(k == 0)
    def _():
        acc_ref[...] = jnp.zeros_like(acc_ref)

    if x_resident:
        # Full X is VMEM-resident (constant block index => DMA'd once); slice the k-chunk.
        koff = pl.multiple_of(k * tk, tk)
        xk = x_ref[pl.ds(koff, tk), :]
    else:
        xk = x_ref[...]

    # Dominant matmul: bf16 inputs, f32 accumulation on the MXU.
    acc_ref[...] += jnp.dot(a_ref[...], xk, preferred_element_type=jnp.float32)

    @pl.when(k == pl.num_programs(1) - 1)
    def _():
        # Small feature-transform matmul (bf16 x bf16 -> f32) + epilogue, all in VMEM.
        out = jnp.dot(acc_ref[...].astype(jnp.bfloat16), w_ref[...],
                      preferred_element_type=jnp.float32)
        out = out + b_ref[...]
        if activation == "relu":
            out = jnp.maximum(out, 0.0)
        elif activation == "log_softmax":
            if cout_real != out.shape[-1]:
                # mask padded (fake) classes out of the softmax
                col = jax.lax.broadcasted_iota(jnp.int32, out.shape, 1)
                out = jnp.where(col < cout_real, out, -1e30)
            m = jnp.max(out, axis=-1, keepdims=True)
            s = out - m
            lse = jnp.log(jnp.sum(jnp.exp(s), axis=-1, keepdims=True))
            out = s - lse
        o_ref[...] = out.astype(o_ref.dtype)


def gcn_layer(a, x, w, b, *, activation, cout_real, out_dtype, tm, tk):
    """One fused GCNConv layer on padded, lane-dense operands."""
    npad = a.shape[0]
    cin = x.shape[1]      # padded in-features
    cout = w.shape[1]     # padded out-features

    x_resident = npad * cin * x.dtype.itemsize <= X_RESIDENT_BUDGET
    if x_resident:
        x_spec = pl.BlockSpec((npad, cin), lambda i, k: (0, 0))   # copied once, stays resident
        x_hbm_bytes = npad * cin * x.dtype.itemsize
    else:
        x_spec = pl.BlockSpec((tk, cin), lambda i, k: (k, 0))     # re-streamed per row tile
        x_hbm_bytes = (npad // tm) * npad * cin * x.dtype.itemsize

    out_itemsize = np.dtype(out_dtype).itemsize
    flops = 2 * npad * npad * cin + 2 * npad * cin * cout
    transcendentals = npad * cout if activation == "log_softmax" else 0
    bytes_accessed = (npad * npad * a.dtype.itemsize          # A, streamed once
                      + x_hbm_bytes                           # X (resident or re-streamed)
                      + cin * cout * w.dtype.itemsize
                      + cout * 4
                      + npad * cout * out_itemsize)

    # VMEM need (factor 2 = double buffering on BlockSpec'd operands) -> explicit scoped limit
    # so v5e's 16 MiB default does not force small buffers; stays well under v7x's 64 MiB.
    x_vmem = 2 * (npad * cin if x_resident else tk * cin) * x.dtype.itemsize
    vmem_need = (2 * tm * tk * a.dtype.itemsize
                 + x_vmem
                 + 2 * cin * cout * w.dtype.itemsize
                 + 2 * cout * 4
                 + tm * cin * 4                               # accumulator scratch
                 + 2 * tm * cout * out_itemsize)
    vmem_limit = int(min(64 << 20, max(32 << 20, vmem_need + (4 << 20))))

    return pl.pallas_call(
        functools.partial(_layer_kernel, activation=activation, cout_real=cout_real,
                          tk=tk, x_resident=x_resident),
        out_shape=jax.ShapeDtypeStruct((npad, cout), out_dtype),
        grid=(npad // tm, npad // tk),
        in_specs=[
            pl.BlockSpec((tm, tk), lambda i, k: (i, k)),      # A row/col tile (bf16)
            x_spec,                                           # X (bf16)
            pl.BlockSpec((cin, cout), lambda i, k: (0, 0)),   # W (resident, bf16)
            pl.BlockSpec((1, cout), lambda i, k: (0, 0)),     # bias (f32)
        ],
        out_specs=pl.BlockSpec((tm, cout), lambda i, k: (i, 0)),
        scratch_shapes=[pltpu.VMEM((tm, cin), jnp.float32)],  # A@X accumulator
        compiler_params=pltpu.CompilerParams(
            dimension_semantics=("parallel", "arbitrary"),
            vmem_limit_bytes=vmem_limit),
        cost_estimate=pl.CostEstimate(flops=flops,
                                      transcendentals=transcendentals,
                                      bytes_accessed=bytes_accessed),
    )(a, x, w, b)


# --------------------------------------------------------------------------------------------
# Small-graph path: all layers fused in a single pallas_call, H kept in VMEM scratch.
# --------------------------------------------------------------------------------------------
def _fused_kernel(a_ref, x_ref, w_ref, b_ref, o_ref, h_ref, *, num_layers, cout_real):
    h_ref[...] = x_ref[...]
    for li in range(num_layers):
        ah = jnp.dot(a_ref[...], h_ref[...], preferred_element_type=jnp.float32)
        out = jnp.dot(ah.astype(jnp.bfloat16), w_ref[li], preferred_element_type=jnp.float32)
        out = out + b_ref[li]
        if li < num_layers - 1:
            h_ref[...] = jnp.maximum(out, 0.0).astype(h_ref.dtype)
        else:
            if cout_real != out.shape[-1]:
                col = jax.lax.broadcasted_iota(jnp.int32, out.shape, 1)
                out = jnp.where(col < cout_real, out, -1e30)
            m = jnp.max(out, axis=-1, keepdims=True)
            s = out - m
            lse = jnp.log(jnp.sum(jnp.exp(s), axis=-1, keepdims=True))
            o_ref[...] = (s - lse).astype(o_ref.dtype)


def _gcn_forward_fused(x, adj, params, *, npad, cmax):
    n = x.shape[0]
    num_layers = len(params)
    cout_real = params[-1][0].shape[1]

    a_pad = _pad2d(adj, npad, npad).astype(jnp.bfloat16)
    x_pad = _pad2d(x, npad, cmax).astype(jnp.bfloat16)
    # All layer transforms padded to a common (cmax, cmax): zero-padded rows/cols contribute
    # nothing because the corresponding padded features stay zero layer to layer.
    w_stack = jnp.stack([_pad2d(w.astype(jnp.bfloat16), cmax, cmax) for w, _ in params])
    b_stack = jnp.stack([_pad2d(b.reshape(1, -1).astype(jnp.float32), 1, cmax)
                         for _, b in params])

    flops = num_layers * (2 * npad * npad * cmax + 2 * npad * cmax * cmax)
    bytes_accessed = (npad * npad * 2 + npad * cmax * 2
                      + num_layers * cmax * cmax * 2 + num_layers * cmax * 4
                      + npad * cmax * 4)
    vmem_need = (2 * npad * npad * 2 + 2 * npad * cmax * 2
                 + 2 * num_layers * cmax * cmax * 2 + 2 * num_layers * cmax * 4
                 + npad * cmax * 2            # H scratch
                 + 2 * npad * cmax * 4)
    vmem_limit = int(min(64 << 20, max(32 << 20, vmem_need + (4 << 20))))

    out = pl.pallas_call(
        functools.partial(_fused_kernel, num_layers=num_layers, cout_real=cout_real),
        out_shape=jax.ShapeDtypeStruct((npad, cmax), jnp.float32),
        grid=(1,),
        in_specs=[
            pl.BlockSpec((npad, npad), lambda i: (0, 0)),
            pl.BlockSpec((npad, cmax), lambda i: (0, 0)),
            pl.BlockSpec((num_layers, cmax, cmax), lambda i: (0, 0, 0)),
            pl.BlockSpec((num_layers, 1, cmax), lambda i: (0, 0, 0)),
        ],
        out_specs=pl.BlockSpec((npad, cmax), lambda i: (0, 0)),
        scratch_shapes=[pltpu.VMEM((npad, cmax), jnp.bfloat16)],   # H (layer intermediate)
        compiler_params=pltpu.CompilerParams(
            dimension_semantics=("arbitrary",),
            vmem_limit_bytes=vmem_limit),
        cost_estimate=pl.CostEstimate(flops=flops,
                                      transcendentals=npad * cmax,
                                      bytes_accessed=bytes_accessed),
    )(a_pad, x_pad, w_stack, b_stack)
    return out[:n, :cout_real]


# --------------------------------------------------------------------------------------------
# Full forward
# --------------------------------------------------------------------------------------------
def gcn_forward(x, adj, params):
    """GCN.forward (eval mode: F.dropout is identity when training=False)."""
    # TODO(synk): training-mode dropout and the real SparseTensor adj_t (sparse SpMM) are not
    #             implemented; the adjacency is taken as a dense row-normalized matrix.
    n = x.shape[0]
    dims = [x.shape[1]] + [w.shape[1] for w, _ in params]
    cmax = _round_up(max(dims), LANE)

    npad_small = max(_round_up(n, LANE), LANE)
    if npad_small <= FUSED_MAX_NODES:
        # Small graph: single fused call, no per-layer HBM round-trips.
        return _gcn_forward_fused(x, adj, params, npad=npad_small, cmax=cmax)

    # Large graph: per-layer tiled kernels with big tiles.
    tm = tk = _choose_tiles(n)
    npad = _round_up(n, tm)
    a_pad = _pad2d(adj, npad, npad).astype(jnp.bfloat16)
    x_cur = _pad2d(x, npad, _round_up(x.shape[1], LANE)).astype(jnp.bfloat16)

    num_layers = len(params)
    for li, (w, b) in enumerate(params):
        cin, cout = w.shape
        w_pad = _pad2d(w, _round_up(cin, LANE), _round_up(cout, LANE)).astype(jnp.bfloat16)
        b_pad = _pad2d(b.reshape(1, -1), 1, _round_up(cout, LANE)).astype(jnp.float32)

        last = li == num_layers - 1
        x_cur = gcn_layer(
            a_pad, x_cur, w_pad, b_pad,
            activation="log_softmax" if last else "relu",
            cout_real=cout,
            out_dtype=jnp.float32 if last else jnp.bfloat16,
            tm=tm, tk=tk)

    return x_cur[:n, :params[-1][0].shape[1]]


# --------------------------------------------------------------------------------------------
if __name__ == "__main__":
    C_IN, HIDDEN, C_OUT, NUM_LAYERS = 16, 32, 8, 3

    def make_problem(key, n, p_edge):
        k_x, k_a, *k_ps = jax.random.split(key, 2 + 2 * NUM_LAYERS)
        x = jax.random.normal(k_x, (n, C_IN), jnp.float32)
        # dense row-normalized adjacency (stand-in for the SparseTensor adj_t)
        a = (jax.random.uniform(k_a, (n, n)) < p_edge).astype(jnp.float32)
        a = a + jnp.eye(n, dtype=jnp.float32)
        a = a / jnp.sum(a, axis=1, keepdims=True)
        dims = [C_IN] + [HIDDEN] * (NUM_LAYERS - 1) + [C_OUT]
        params = []
        for i in range(NUM_LAYERS):
            fin, fout = dims[i], dims[i + 1]
            limit = (6.0 / (fin + fout)) ** 0.5
            w = jax.random.uniform(k_ps[2 * i], (fin, fout), jnp.float32, -limit, limit)
            b = jax.random.uniform(k_ps[2 * i + 1], (fout,), jnp.float32, -0.1, 0.1)
            params.append((w, b))
        return x, a, params

    def reference(x, a, params):
        h = x
        for w, b in params[:-1]:
            h = jnp.maximum(a @ (h @ w) + b, 0.0)
        w, b = params[-1]
        return jax.nn.log_softmax(a @ (h @ w) + b, axis=-1)

    key = jax.random.PRNGKey(0)
    k_small, k_large = jax.random.split(key)

    # Case 1 (small shapes, fused single-call path); Case 2 exercises the tiled large-graph path.
    for name, k_case, n, p_edge in [("fused_small", k_small, 64, 0.1),
                                    ("tiled_large", k_large, 1500, 0.01)]:
        x, a, params = make_problem(k_case, n, p_edge)
        out = jax.block_until_ready(gcn_forward(x, a, params))
        ref = reference(x, a, params)

        assert out.shape == (n, C_OUT), (name, out.shape)
        assert out.dtype == jnp.float32, (name, out.dtype)
        # log_softmax rows must (exp-)sum to ~1
        assert jnp.allclose(jnp.sum(jnp.exp(out), axis=-1), 1.0, atol=1e-3), name
        # matches the f32 reference within bf16-streaming tolerance
        err = float(jnp.max(jnp.abs(out - ref)))
        assert jnp.allclose(out, ref, atol=7.5e-2, rtol=2e-2), (name, err)

    print("KERNEL_OK")
</pallas_src>

<mosaic_0001>
module attributes {stable_mosaic.version = 11 : i64} {
  func.func @_fused_kernel(%arg0: i32, %arg1: memref<128x128xbf16, #tpu.memory_space<vmem>>, %arg2: memref<128x128xbf16, #tpu.memory_space<vmem>>, %arg3: memref<3x128x128xbf16, #tpu.memory_space<vmem>>, %arg4: memref<3x1x128xf32, #tpu.memory_space<vmem>>, %arg5: memref<128x128xf32, #tpu.memory_space<vmem>>, %arg6: memref<128x128xbf16, #tpu.memory_space<vmem>>) attributes {dimension_semantics = [#tpu.dimension_semantics<arbitrary>], iteration_bounds = array<i64: 1>, scalar_prefetch = 0 : i64, scratch_operands = 1 : i64, tpu.core_type = #tpu.core_type<tc>, window_params = [{pipeline_mode = #tpu.pipeline_mode<synchronous>, transform_indices = @transform_0, window_bounds = array<i64: 128, 128>}, {pipeline_mode = #tpu.pipeline_mode<synchronous>, transform_indices = @transform_1, window_bounds = array<i64: 128, 128>}, {pipeline_mode = #tpu.pipeline_mode<synchronous>, transform_indices = @transform_2, window_bounds = array<i64: 3, 128, 128>}, {pipeline_mode = #tpu.pipeline_mode<synchronous>, transform_indices = @transform_3, window_bounds = array<i64: 3, 1, 128>}, {pipeline_mode = #tpu.pipeline_mode<synchronous>, transform_indices = @transform_4, window_bounds = array<i64: 128, 128>}]} {
    %c0 = arith.constant 0 : index
    %c0_0 = arith.constant 0 : index
    %0 = vector.load %arg2[%c0, %c0_0] : memref<128x128xbf16, #tpu.memory_space<vmem>>, vector<128x128xbf16>
    %c0_1 = arith.constant 0 : index
    %c0_2 = arith.constant 0 : index
    %1 = vector.load %arg6[%c0_1, %c0_2] : memref<128x128xbf16, #tpu.memory_space<vmem>>, vector<128x128xbf16>
    tpu.vector_store %arg6[%c0_1, %c0_2], %0 {strides = array<i32>} : memref<128x128xbf16, #tpu.memory_space<vmem>>, vector<128x128xbf16>,
    %c0_3 = arith.constant 0 : index
    %c0_4 = arith.constant 0 : index
    %2 = vector.load %arg1[%c0_3, %c0_4] : memref<128x128xbf16, #tpu.memory_space<vmem>>, vector<128x128xbf16>
    %c0_5 = arith.constant 0 : index
    %c0_6 = arith.constant 0 : index
    %3 = vector.load %arg6[%c0_5, %c0_6] : memref<128x128xbf16, #tpu.memory_space<vmem>>, vector<128x128xbf16>
    %cst = arith.constant dense<0.000000e+00> : vector<128x128xf32>
    %4 = tpu.matmul %2, %3, %cst {dimension_numbers = #tpu.dot_dimension_numbers<[1], [0], [0], [1], [0, 0, 1, 1], [], []>} : vector<128x128xbf16>, vector<128x128xbf16>, vector<128x128xf32> -> vector<128x128xf32>
    %5 = arith.truncf %4 : vector<128x128xf32> to vector<128x128xbf16>
    %c0_7 = arith.constant 0 : index
    %c0_8 = arith.constant 0 : index
    %c0_9 = arith.constant 0 : index
    %6 = vector.load %arg3[%c0_7, %c0_8, %c0_9] : memref<3x128x128xbf16, #tpu.memory_space<vmem>>, vector<1x128x128xbf16>
    %7 = vector.shape_cast %6 : vector<1x128x128xbf16> to vector<128x128xbf16>
    %cst_10 = arith.constant dense<0.000000e+00> : vector<128x128xf32>
    %8 = tpu.matmul %5, %7, %cst_10 {dimension_numbers = #tpu.dot_dimension_numbers<[1], [0], [0], [1], [0, 0, 1, 1], [], []>} : vector<128x128xbf16>, vector<128x128xbf16>, vector<128x128xf32> -> vector<128x128xf32>
    %c0_11 = arith.constant 0 : index
    %c0_12 = arith.constant 0 : index
    %c0_13 = arith.constant 0 : index
    %9 = vector.load %arg4[%c0_11, %c0_12, %c0_13] : memref<3x1x128xf32, #tpu.memory_space<vmem>>, vector<1x1x128xf32>
    %10 = vector.shape_cast %9 : vector<1x1x128xf32> to vector<1x128xf32>
    %11 = vector.broadcast %10 : vector<1x128xf32> to vector<128x128xf32>
    %12 = arith.addf %8, %11 : vector<128x128xf32>
    %cst_14 = arith.constant 0.000000e+00 : f32
    %13 = vector.broadcast %cst_14 : f32 to vector<128x128xf32>
    %14 = arith.maximumf %12, %13 : vector<128x128xf32>
    %15 = arith.truncf %14 : vector<128x128xf32> to vector<128x128xbf16>
    %c0_15 = arith.constant 0 : index
    %c0_16 = arith.constant 0 : index
    %16 = vector.load %arg6[%c0_15, %c0_16] : memref<128x128xbf16, #tpu.memory_space<vmem>>, vector<128x128xbf16>
    tpu.vector_store %arg6[%c0_15, %c0_16], %15 {strides = array<i32>} : memref<128x128xbf16, #tpu.memory_space<vmem>>, vector<128x128xbf16>,
    %c0_17 = arith.constant 0 : index
    %c0_18 = arith.constant 0 : index
    %17 = vector.load %arg1[%c0_17, %c0_18] : memref<128x128xbf16, #tpu.memory_space<vmem>>, vector<128x128xbf16>
    %c0_19 = arith.constant 0 : index
    %c0_20 = arith.constant 0 : index
    %18 = vector.load %arg6[%c0_19, %c0_20] : memref<128x128xbf16, #tpu.memory_space<vmem>>, vector<128x128xbf16>
    %cst_21 = arith.constant dense<0.000000e+00> : vector<128x128xf32>
    %19 = tpu.matmul %17, %18, %cst_21 {dimension_numbers = #tpu.dot_dimension_numbers<[1], [0], [0], [1], [0, 0, 1, 1], [], []>} : vector<128x128xbf16>, vector<128x128xbf16>, vector<128x128xf32> -> vector<128x128xf32>
    %20 = arith.truncf %19 : vector<128x128xf32> to vector<128x128xbf16>
    %c1 = arith.constant 1 : index
    %c0_22 = arith.constant 0 : index
    %c0_23 = arith.constant 0 : index
    %21 = vector.load %arg3[%c1, %c0_22, %c0_23] : memref<3x128x128xbf16, #tpu.memory_space<vmem>>, vector<1x128x128xbf16>
    %22 = vector.shape_cast %21 : vector<1x128x128xbf16> to vector<128x128xbf16>
    %cst_24 = arith.constant dense<0.000000e+00> : vector<128x128xf32>
    %23 = tpu.matmul %20, %22, %cst_24 {dimension_numbers = #tpu.dot_dimension_numbers<[1], [0], [0], [1], [0, 0, 1, 1], [], []>} : vector<128x128xbf16>, vector<128x128xbf16>, vector<128x128xf32> -> vector<128x128xf32>
    %c1_25 = arith.constant 1 : index
    %c0_26 = arith.constant 0 : index
    %c0_27 = arith.constant 0 : index
    %24 = vector.load %arg4[%c1_25, %c0_26, %c0_27] : memref<3x1x128xf32, #tpu.memory_space<vmem>>, vector<1x1x128xf32>
    %25 = vector.shape_cast %24 : vector<1x1x128xf32> to vector<1x128xf32>
    %26 = vector.broadcast %25 : vector<1x128xf32> to vector<128x128xf32>
    %27 = arith.addf %23, %26 : vector<128x128xf32>
    %cst_28 = arith.constant 0.000000e+00 : f32
    %28 = vector.broadcast %cst_28 : f32 to vector<128x128xf32>
    %29 = arith.maximumf %27, %28 : vector<128x128xf32>
    %30 = arith.truncf %29 : vector<128x128xf32> to vector<128x128xbf16>
    %c0_29 = arith.constant 0 : index
    %c0_30 = arith.constant 0 : index
    %31 = vector.load %arg6[%c0_29, %c0_30] : memref<128x128xbf16, #tpu.memory_space<vmem>>, vector<128x128xbf16>
    tpu.vector_store %arg6[%c0_29, %c0_30], %30 {strides = array<i32>} : memref<128x128xbf16, #tpu.memory_space<vmem>>, vector<128x128xbf16>,
    %c0_31 = arith.constant 0 : index
    %c0_32 = arith.constant 0 : index
    %32 = vector.load %arg1[%c0_31, %c0_32] : memref<128x128xbf16, #tpu.memory_space<vmem>>, vector<128x128xbf16>
    %c0_33 = arith.constant 0 : index
    %c0_34 = arith.constant 0 : index
    %33 = vector.load %arg6[%c0_33, %c0_34] : memref<128x128xbf16, #tpu.memory_space<vmem>>, vector<128x128xbf16>
    %cst_35 = arith.constant dense<0.000000e+00> : vector<128x128xf32>
    %34 = tpu.matmul %32, %33, %cst_35 {dimension_numbers = #tpu.dot_dimension_numbers<[1], [0], [0], [1], [0, 0, 1, 1], [], []>} : vector<128x128xbf16>, vector<128x128xbf16>, vector<128x128xf32> -> vector<128x128xf32>
    %35 = arith.truncf %34 : vector<128x128xf32> to vector<128x128xbf16>
    %c2 = arith.constant 2 : index
    %c0_36 = arith.constant 0 : index
    %c0_37 = arith.constant 0 : index
    %36 = vector.load %arg3[%c2, %c0_36, %c0_37] : memref<3x128x128xbf16, #tpu.memory_space<vmem>>, vector<1x128x128xbf16>
    %37 = vector.shape_cast %36 : vector<1x128x128xbf16> to vector<128x128xbf16>
    %cst_38 = arith.constant dense<0.000000e+00> : vector<128x128xf32>
    %38 = tpu.matmul %35, %37, %cst_38 {dimension_numbers = #tpu.dot_dimension_numbers<[1], [0], [0], [1], [0, 0, 1, 1], [], []>} : vector<128x128xbf16>, vector<128x128xbf16>, vector<128x128xf32> -> vector<128x128xf32>
    %c2_39 = arith.constant 2 : index
    %c0_40 = arith.constant 0 : index
    %c0_41 = arith.constant 0 : index
    %39 = vector.load %arg4[%c2_39, %c0_40, %c0_41] : memref<3x1x128xf32, #tpu.memory_space<vmem>>, vector<1x1x128xf32>
    %40 = vector.shape_cast %39 : vector<1x1x128xf32> to vector<1x128xf32>
    %41 = vector.broadcast %40 : vector<1x128xf32> to vector<128x128xf32>
    %42 = arith.addf %38, %41 : vector<128x128xf32>
    %43 = tpu.iota {dimensions = array<i32: 1>} : vector<128x128xi32>
    %c8_i32 = arith.constant 8 : i32
    %44 = vector.broadcast %c8_i32 : i32 to vector<128x128xi32>
    %45 = arith.cmpi slt, %43, %44 : vector<128x128xi32>
    %cst_42 = arith.constant -1.000000e+30 : f32
    %46 = vector.broadcast %cst_42 : f32 to vector<128x128xf32>
    %47 = arith.select %45, %42, %46 : vector<128x128xi1>, vector<128x128xf32>
    %cst_43 = arith.constant dense<0xFF800000> : vector<128xf32>
    %48 = vector.multi_reduction <maximumf>, %47, %cst_43 [1] : vector<128x128xf32> to vector<128xf32>
    %49 = vector.shape_cast %48 : vector<128xf32> to vector<128x1xf32>
    %50 = vector.broadcast %49 : vector<128x1xf32> to vector<128x128xf32>
    %51 = arith.subf %47, %50 : vector<128x128xf32>
    %52 = math.exp %51 : vector<128x128xf32>
    %cst_44 = arith.constant dense<0.000000e+00> : vector<128xf32>
    %53 = vector.multi_reduction <add>, %52, %cst_44 [1] : vector<128x128xf32> to vector<128xf32>
    %54 = vector.shape_cast %53 : vector<128xf32> to vector<128x1xf32>
    %55 = math.log %54 : vector<128x1xf32>
    %56 = vector.broadcast %55 : vector<128x1xf32> to vector<128x128xf32>
    %57 = arith.subf %51, %56 : vector<128x128xf32>
    %c0_45 = arith.constant 0 : index
    %c0_46 = arith.constant 0 : index
    %58 = vector.load %arg5[%c0_45, %c0_46] : memref<128x128xf32, #tpu.memory_space<vmem>>, vector<128x128xf32>
    tpu.vector_store %arg5[%c0_45, %c0_46], %57 {strides = array<i32>} : memref<128x128xf32, #tpu.memory_space<vmem>>, vector<128x128xf32>,
    return
  }
  func.func @transform_0(%arg0: i32) -> (i32, i32) {
    %c0_i32 = arith.constant 0 : i32
    %c0_i32_0 = arith.constant 0 : i32
    %c0_i32_1 = arith.constant 0 : i32
    return %c0_i32, %c0_i32_0 : i32, i32
  }
  func.func @transform_1(%arg0: i32) -> (i32, i32) {
    %c0_i32 = arith.constant 0 : i32
    %c0_i32_0 = arith.constant 0 : i32
    %c0_i32_1 = arith.constant 0 : i32
    return %c0_i32, %c0_i32_0 : i32, i32
  }
  func.func @transform_2(%arg0: i32) -> (i32, i32, i32) {
    %c0_i32 = arith.constant 0 : i32
    %c0_i32_0 = arith.constant 0 : i32
    %c0_i32_1 = arith.constant 0 : i32
    %c0_i32_2 = arith.constant 0 : i32
    return %c0_i32, %c0_i32_0, %c0_i32_1 : i32, i32, i32
  }
  func.func @transform_3(%arg0: i32) -> (i32, i32, i32) {
    %c0_i32 = arith.constant 0 : i32
    %c0_i32_0 = arith.constant 0 : i32
    %c0_i32_1 = arith.constant 0 : i32
    %c0_i32_2 = arith.constant 0 : i32
    return %c0_i32, %c0_i32_0, %c0_i32_1 : i32, i32, i32
  }
  func.func @transform_4(%arg0: i32) -> (i32, i32) {
    %c0_i32 = arith.constant 0 : i32
    %c0_i32_0 = arith.constant 0 : i32
    %c0_i32_1 = arith.constant 0 : i32
    return %c0_i32, %c0_i32_0 : i32, i32
  }
}

</mosaic_0001>

<bundles_post_ra>
// kernel: tpu_custom_call.1
= control target key start
LH: loop header
LB: loop body
LE: loop exit
PB: predicated region body
PF: predicated region fallthrough
CT: control target
= control target key end

     0   :  { %9 = vsyncpa [#allocation4], 0  ;;  %s2634_s0 = inlined_call_operand.hbm [shape: bf16[128,128], index: 0, kind: input, shape index: {}]   ;;  %s2635_s1 = inlined_call_operand.hbm [shape: bf16[128,128], index: 1, kind: input, shape index: {}]   ;;  %s2636_s2 = inlined_call_operand.hbm [shape: bf16[3,128,128], index: 2, kind: input, shape index: {}]   ;;  %s2637_s3 = inlined_call_operand.vmem [shape: f32[3,1,128], index: 3, kind: input, shape index: {}]   ;;  %s2638_s4 = inlined_call_operand.hbm [shape: f32[128,128], index: 4, kind: output, shape index: {}]  }
   0x1   :  { %10 = vsyncpa [#allocation7], 0 }
   0x2   :  { %11 = vsyncpa [#allocation5], 0  ;;  %s2457_s15 = smov [#allocation6]   ;;  %s2458_s17 = smov [#allocation3]  }
   0x3   :  { %s29_s16 = sshll.u32 %s2457_s15, 4  ;;  %s17_s18 = sshll.u32 %s2458_s17, 4  ;;  %s30_s16 = int_to_ptr.vmem [resolvable:$true] %s29_s16  ;;  %s18_s18 = int_to_ptr.vmem [resolvable:$true] %s17_s18 }
   0x4   :  { %s2379_s19 = scalar_lea.vmem %s30_s16, 1024  ;;  %p2384_p1 = scmp.lt.s32.totalorder %s30_s16, %s30_s16 }
   0x5   :  { %p2380_p0 = scmp.ne.s32.totalorder %s30_s16, %s2379_s19  ;;  %p2385_p2 = scmp.lt.s32.totalorder %s2379_s19, %s2379_s19 }
   0x7   :  { %p2386_p3 = por %p2385_p2, %p2384_p1 }
   0x9   :  { %p2387_p4 = pnand %p2386_p3, %p2380_p0 }
   0xb   :  { %2390 = shalt.err (!%p2387_p4)
}
   0xc   :  { %s2459_s20 = smov 64   ;;  %s2460_s21 = smov 4  }
   0xd   :  { %35 = dma.hbm_to_vmem [thread:$0]  %s2635_s1, 1024, %s30_s16, [#allocation7], %s2459_s20, %s2459_s20, %s2460_s21  }
   0xe   :  { %s2399_s24 = scalar_lea.vmem %s18_s18, 1024  ;;  %p2404_p6 = scmp.lt.s32.totalorder %s18_s18, %s18_s18 }
   0xf   :  { %p2400_p5 = scmp.ne.s32.totalorder %s18_s18, %s2399_s24  ;;  %p2405_p7 = scmp.lt.s32.totalorder %s2399_s24, %s2399_s24 }
  0x11   :  { %p2406_p8 = por %p2405_p7, %p2404_p6 }
  0x13   :  { %p2407_p9 = pnand %p2406_p8, %p2400_p5 }
  0x15   :  { %2410 = shalt.err (!%p2407_p9)
}
  0x16   :  { %23 = dma.hbm_to_vmem [thread:$0]  %s2634_s0, 1024, %s18_s18, [#allocation4], %s2459_s20, %s2459_s20, %s2460_s21  }
  0x17   :  { %s2461_s27 = smov [#allocation8]  }
  0x18   :  { %s41_s28 = sshll.u32 %s2461_s27, 4  ;;  %s42_s28 = int_to_ptr.vmem [resolvable:$true] %s41_s28 }
  0x19   :  { %s2419_s29 = scalar_lea.vmem %s42_s28, 3072  ;;  %p2424_p11 = scmp.lt.s32.totalorder %s42_s28, %s42_s28 }
  0x1a   :  { %p2420_p10 = scmp.ne.s32.totalorder %s42_s28, %s2419_s29  ;;  %p2425_p12 = scmp.lt.s32.totalorder %s2419_s29, %s2419_s29 }
  0x1c   :  { %p2426_p13 = por %p2425_p12, %p2424_p11 }
  0x1e   :  { %p2427_p0 = pnand %p2426_p13, %p2420_p10 }
  0x20   :  { %2430 = shalt.err (!%p2427_p0)
}
  0x21   :  { %47 = dma.hbm_to_vmem [thread:$0]  %s2636_s2, 3072, %s42_s28, [#allocation7], %s2459_s20, %s2459_s20, %s2460_s21  }
  0x22   :  { %2451 = dma.done.wait [#allocation4], 1024  }
  0x23   :  { %2452 = vsyncadd [#allocation4], 4294966272 }
  0x24   :  { %2453 = dma.done.wait [#allocation7], 4096  }
  0x25   :  { %2454 = vsyncadd [#allocation7], 4294963200  ;;  %v74_v0 = vld [vmem:[#allocation6 + $0x38] sm:$0xff]   ;;  %v72_v1 = vld [vmem:[#allocation6 + $0x30] sm:$0xff]  }
  0x26   :  { %v70_v2 = vld [vmem:[#allocation6 + $0x28] sm:$0xff]   ;;  %90 = vst [vmem:[#allocation2 + $0x38] sm:$0xff] %v74_v0   ;;  %88 = vst [vmem:[#allocation2 + $0x30] sm:$0xff] %v72_v1   ;;  %v68_v3 = vld [vmem:[#allocation6 + $0x20] sm:$0xff]  }
  0x27   :  { %86 = vst [vmem:[#allocation2 + $0x28] sm:$0xff] %v70_v2   ;;  %v66_v4 = vld [vmem:[#allocation6 + $0x18] sm:$0xff]   ;;  %v64_v5 = vld [vmem:[#allocation6 + $0x10] sm:$0xff]   ;;  %84 = vst [vmem:[#allocation2 + $0x20] sm:$0xff] %v68_v3  }
  0x28   :  { %82 = vst [vmem:[#allocation2 + $0x18] sm:$0xff] %v66_v4   ;;  %80 = vst [vmem:[#allocation2 + $0x10] sm:$0xff] %v64_v5   ;;  %v62_v6 = vld [vmem:[#allocation6 + $0x8] sm:$0xff]   ;;  %v60_v7 = vld [vmem:[#allocation6] sm:$0xff]  }
  0x29   :  { %78 = vst [vmem:[#allocation2 + $0x8] sm:$0xff] %v62_v6   ;;  %76 = vst [vmem:[#allocation2] sm:$0xff] %v60_v7   ;;  %v2243_v8 = vld [vmem:[#allocation3] sm:$0xff]   ;;  %v2251_v14 = vld [vmem:[#allocation8 + $0x38] sm:$0xff]  }
  0x2a   :  { %2051 = vmatprep.mubr.bf16.mxu0 %v2243_v8  ;;  %v2252_v15 = vld [vmem:[#allocation8 + $0x30] sm:$0xff]   ;;  %2067 = vmatprep.subr.bf16.mxu1 %v2251_v14  ;;  %v2253_v16 = vld [vmem:[#allocation8 + $0x28] sm:$0xff]   ;;  %v2254_v18 = vld [vmem:[#allocation8 + $0x20] sm:$0xff]  }
  0x2b   :  { %2068 = vmatpush3.bf16.msra.mxu1 %v2251_v14  ;;  %v2255_v20 = vld [vmem:[#allocation8 + $0x18] sm:$0xff]   ;;  %v2256_v22 = vld [vmem:[#allocation8 + $0x10] sm:$0xff]   ;;  %v2244_v23 = vld [vmem:[#allocation3 + $0x8] sm:$0xff]  }
  0x2c   :  { %2069 = vmatprep.subr.bf16.mxu1 %v2252_v15  ;;  %v2245_v24 = vld [vmem:[#allocation3 + $0x10] sm:$0xff]   ;;  %v2246_v25 = vld [vmem:[#allocation3 + $0x18] sm:$0xff]   ;;  %v2247_v26 = vld [vmem:[#allocation3 + $0x20] sm:$0xff]  }
  0x2d   :  { %v2235_v9 = vld [vmem:[#allocation2 + $0x38] sm:$0xff]   ;;  %v2236_v10 = vld [vmem:[#allocation2 + $0x30] sm:$0xff]   ;;  %v2248_v27 = vld [vmem:[#allocation3 + $0x28] sm:$0xff]  }
  0x2e   :  { %2035 = vmatprep.subr.bf16.mxu0 %v2235_v9  ;;  %v2237_v11 = vld [vmem:[#allocation2 + $0x28] sm:$0xff]   ;;  %v2238_v12 = vld [vmem:[#allocation2 + $0x20] sm:$0xff]   ;;  %v2249_v28 = vld [vmem:[#allocation3 + $0x30] sm:$0xff]  }
  0x2f   :  { %2036 = vmatpush3.bf16.msra.mxu0 %v2235_v9  ;;  %v2239_v13 = vld [vmem:[#allocation2 + $0x18] sm:$0xff]   ;;  %v2240_v17 = vld [vmem:[#allocation2 + $0x10] sm:$0xff]   ;;  %2070 = vmatpush3.bf16.msra.mxu1 %v2252_v15  ;;  %v2257_v30 = vld [vmem:[#allocation8 + $0x8] sm:$0xff]  }
  0x30   :  { %2037 = vmatprep.subr.bf16.mxu0 %v2236_v10  ;;  %v2241_v19 = vld [vmem:[#allocation2 + $0x8] sm:$0xff]   ;;  %2071 = vmatprep.subr.bf16.mxu1 %v2253_v16  ;;  %v2242_v21 = vld [vmem:[#allocation2] sm:$0xff]   ;;  %v2250_v29 = vld [vmem:[#allocation3 + $0x38] sm:$0xff]  }
  0x31   :  { %v2258_v31 = vld [vmem:[#allocation8] sm:$0xff]   ;;  %v2275_v57 = vld [vmem:[#allocation8 + $0x78] sm:$0xff]   ;;  %v2276_v58 = vld [vmem:[#allocation8 + $0x70] sm:$0xff]  }
  0x32   :  { %v2267_v56 = vld [vmem:[#allocation3] sm:$0xff]   ;;  %v2277_v59 = vld [vmem:[#allocation8 + $0x68] sm:$0xff]   ;;  %v2279_v61 = vld [vmem:[#allocation8 + $0x58] sm:$0xff]  }
  0x33   :  { %2038 = vmatpush3.bf16.msra.mxu0 %v2236_v10  ;;  %2072 = vmatpush3.bf16.msra.mxu1 %v2253_v16  ;;  %v2278_v60 = vld [vmem:[#allocation8 + $0x60] sm:$0xff]   ;;  %v2280_v62 = vld [vmem:[#allocation8 + $0x50] sm:$0xff]  }
  0x34   :  { %2039 = vmatprep.subr.bf16.mxu0 %v2237_v11  ;;  %2073 = vmatprep.subr.bf16.mxu1 %v2254_v18  ;;  %v1720_v0 = vld [vmem:[%s2637_s3] ss:$0 sm:$0xff] }
  0x37   :  { %2040 = vmatpush3.bf16.msra.mxu0 %v2237_v11  ;;  %2074 = vmatpush3.bf16.msra.mxu1 %v2254_v18 }
  0x38   :  { %2041 = vmatprep.subr.bf16.mxu0 %v2238_v12  ;;  %2075 = vmatprep.subr.bf16.mxu1 %v2255_v20 }
  0x3b   :  { %2042 = vmatpush3.bf16.msra.mxu0 %v2238_v12  ;;  %2076 = vmatpush3.bf16.msra.mxu1 %v2255_v20 }
  0x3c   :  { %2043 = vmatprep.subr.bf16.mxu0 %v2239_v13  ;;  %2077 = vmatprep.subr.bf16.mxu1 %v2256_v22 }
  0x3f   :  { %2044 = vmatpush3.bf16.msra.mxu0 %v2239_v13  ;;  %2078 = vmatpush3.bf16.msra.mxu1 %v2256_v22 }
  0x40   :  { %2045 = vmatprep.subr.bf16.mxu0 %v2240_v17  ;;  %2079 = vmatprep.subr.bf16.mxu1 %v2257_v30 }
  0x43   :  { %2046 = vmatpush3.bf16.msra.mxu0 %v2240_v17  ;;  %2080 = vmatpush3.bf16.msra.mxu1 %v2257_v30 }
  0x44   :  { %2047 = vmatprep.subr.bf16.mxu0 %v2241_v19  ;;  %2081 = vmatprep.subr.bf16.mxu1 %v2258_v31 }
  0x47   :  { %2048 = vmatpush3.bf16.msra.mxu0 %v2241_v19  ;;  %2082 = vmatpush3.bf16.msra.mxu1 %v2258_v31 }
  0x48   :  { %2049 = vmatprep.subr.bf16.mxu0 %v2242_v21  ;;  %2131 = vmatprep.subr.bf16.mxu1 %v2275_v57 }
  0x4b   :  { %2050 = vmatpush3.bf16.msra.mxu0 %v2242_v21 }
  0x4e   :  { %2052 = vmatmul.mubr.bf16.vlgmr.msra.gmra.mxu0 %v2244_v23 }
  0x4f   :  { %2055 = vmatprep.mubr.bf16.mxu0 %v2245_v24 }
  0x56   :  { %2056 = vmatmul.mubr.bf16.gmra.mxu0 %v2246_v25 }
  0x57   :  { %2059 = vmatprep.mubr.bf16.mxu0 %v2247_v26 }
  0x5e   :  { %2060 = vmatmul.mubr.bf16.gmra.mxu0 %v2248_v27 }
  0x5f   :  { %2063 = vmatprep.mubr.bf16.mxu0 %v2249_v28 }
  0x66   :  { %2064 = vmatmul.mubr.bf16.gmra.mxu0 %v2250_v29 }
  0x67   :  { %2115 = vmatprep.mubr.bf16.mxu0 %v2267_v56 }
 0x10e   :  { %v2053_v32 = vpop.f32.mrf.mxu0 }
 0x110   :  { %v254_v33 = vpop.f32.mrf.mxu0 }
 0x112   :  { %v2054_v34 = vpop.f32.mrf.mxu0 }
 0x113   :  { %v318_v37 = vpack.c.bf16 %v2054_v34, %v2053_v32 }
 0x114   :  { %v257_v35 = vpop.f32.mrf.mxu0 }
 0x115   :  { %v317_v36 = vpack.c.bf16 %v257_v35, %v254_v33 }
 0x116   :  { %v2057_v38 = vpop.f32.mrf.mxu0 }
 0x117   :  { %2083 = vmatprep.mubr.bf16.mxu1 %v317_v36 }
 0x118   :  { %v270_v39 = vpop.f32.mrf.mxu0  ;;  %2084 = vmatmul.mubr.bf16.vlgmr.msra.gmra.mxu1 %v318_v37 }
 0x119   :  { %2132 = vmatpush3.bf16.msra.mxu1 %v2275_v57 }
 0x11a   :  { %v2058_v40 = vpop.f32.mrf.mxu0  ;;  %2133 = vmatprep.subr.bf16.mxu1 %v2276_v58 }
 0x11b   :  { %v320_v43 = vpack.c.bf16 %v2058_v40, %v2057_v38 }
 0x11c   :  { %v273_v41 = vpop.f32.mrf.mxu0 }
 0x11d   :  { %v319_v42 = vpack.c.bf16 %v273_v41, %v270_v39  ;;  %2134 = vmatpush3.bf16.msra.mxu1 %v2276_v58 }
 0x11e   :  { %v2061_v44 = vpop.f32.mrf.mxu0  ;;  %2135 = vmatprep.subr.bf16.mxu1 %v2277_v59 }
 0x11f   :  { %2087 = vmatprep.mubr.bf16.mxu1 %v319_v42 }
 0x120   :  { %v286_v45 = vpop.f32.mrf.mxu0  ;;  %2088 = vmatmul.mubr.bf16.gmra.mxu1 %v320_v43 }
 0x121   :  { %2136 = vmatpush3.bf16.msra.mxu1 %v2277_v59 }
 0x122   :  { %v2062_v46 = vpop.f32.mrf.mxu0  ;;  %2137 = vmatprep.subr.bf16.mxu1 %v2278_v60 }
 0x123   :  { %v322_v49 = vpack.c.bf16 %v2062_v46, %v2061_v44 }
 0x124   :  { %v289_v47 = vpop.f32.mrf.mxu0 }
 0x125   :  { %v321_v48 = vpack.c.bf16 %v289_v47, %v286_v45  ;;  %2138 = vmatpush3.bf16.msra.mxu1 %v2278_v60 }
 0x126   :  { %v2065_v50 = vpop.f32.mrf.mxu0  ;;  %2139 = vmatprep.subr.bf16.mxu1 %v2279_v61 }
 0x127   :  { %2091 = vmatprep.mubr.bf16.mxu1 %v321_v48 }
 0x128   :  { %v302_v51 = vpop.f32.mrf.mxu0  ;;  %2092 = vmatmul.mubr.bf16.gmra.mxu1 %v322_v49 }
 0x129   :  { %2140 = vmatpush3.bf16.msra.mxu1 %v2279_v61 }
 0x12a   :  { %v2066_v52 = vpop.f32.mrf.mxu0  ;;  %2141 = vmatprep.subr.bf16.mxu1 %v2280_v62 }
 0x12b   :  { %v324_v55 = vpack.c.bf16 %v2066_v52, %v2065_v50 }
 0x12c   :  { %v305_v53 = vpop.f32.mrf.mxu0 }
 0x12d   :  { %v323_v54 = vpack.c.bf16 %v305_v53, %v302_v51  ;;  %2142 = vmatpush3.bf16.msra.mxu1 %v2280_v62 }
 0x12f   :  { %2095 = vmatprep.mubr.bf16.mxu1 %v323_v54 }
 0x130   :  { %2096 = vmatmul.mubr.bf16.gmra.mxu1 %v324_v55 }
 0x1d8   :  { %v2085_v63 = vpop.f32.mrf.mxu1 }
 0x1d9   :  { %v439_v2 = vadd.f32 %v2085_v63, %v1720_v0 }
 0x1da   :  { %v430_v1 = vpop.f32.mrf.mxu1 }
 0x1db   :  { %v431_v4 = vadd.f32 %v1720_v0, %v430_v1  ;;  %v495_v7 = vmax.f32 %v439_v2, 0.0  ;;  %v2269_v1 = vld [vmem:[#allocation3 + $0x10] sm:$0xff]   ;;  %v2270_v2 = vld [vmem:[#allocation3 + $0x18] sm:$0xff]  }
 0x1dc   :  { %v2086_v3 = vpop.f32.mrf.mxu1 }
 0x1dd   :  { %v442_v5 = vadd.f32 %v2086_v3, %v1720_v0  ;;  %v493_v11 = vmax.f32 %v431_v4, 0.0  ;;  %v2271_v3 = vld [vmem:[#allocation3 + $0x20] sm:$0xff]   ;;  %v2272_v4 = vld [vmem:[#allocation3 + $0x28] sm:$0xff]  }
 0x1de   :  { %v433_v6 = vpop.f32.mrf.mxu1 }
 0x1df   :  { %v496_v8 = vmax.f32 %v442_v5, 0.0  ;;  %v434_v9 = vadd.f32 %v1720_v0, %v433_v6  ;;  %v2273_v5 = vld [vmem:[#allocation3 + $0x30] sm:$0xff]   ;;  %v2274_v6 = vld [vmem:[#allocation3 + $0x38] sm:$0xff]  }
 0x1e0   :  { %v2089_v10 = vpop.f32.mrf.mxu1 }
 0x1e1   :  { %v1853_v12 = vpack.c.bf16 %v496_v8, %v495_v7  ;;  %v494_v13 = vmax.f32 %v434_v9, 0.0  ;;  %v455_v16 = vadd.f32 %v2089_v10, %v1720_v0  ;;  %v2281_v7 = vld [vmem:[#allocation8 + $0x48] sm:$0xff]   ;;  %v2282_v8 = vld [vmem:[#allocation8 + $0x40] sm:$0xff]  }
 0x1e2   :  { %v446_v14 = vpop.f32.mrf.mxu1  ;;  %2143 = vmatprep.subr.bf16.mxu1 %v2281_v7 }
 0x1e3   :  { %1925 = vst [vmem:[#allocation2 + $0x8] sm:$0xff] %v1853_v12   ;;  %v1848_v15 = vpack.c.bf16 %v494_v13, %v493_v11  ;;  %v447_v18 = vadd.f32 %v1720_v0, %v446_v14  ;;  %v499_v21 = vmax.f32 %v455_v16, 0.0  ;;  %2144 = vmatpush3.bf16.msra.mxu1 %v2281_v7 }
 0x1e4   :  { %v2090_v17 = vpop.f32.mrf.mxu1  ;;  %2145 = vmatprep.subr.bf16.mxu1 %v2282_v8 }
 0x1e5   :  { %1849 = vst [vmem:[#allocation2] sm:$0xff] %v1848_v15   ;;  %v458_v19 = vadd.f32 %v2090_v17, %v1720_v0  ;;  %v497_v25 = vmax.f32 %v447_v18, 0.0 }
 0x1e6   :  { %v449_v20 = vpop.f32.mrf.mxu1 }
 0x1e7   :  { %v500_v22 = vmax.f32 %v458_v19, 0.0  ;;  %v450_v23 = vadd.f32 %v1720_v0, %v449_v20  ;;  %2146 = vmatpush3.bf16.msra.mxu1 %v2282_v8 }
 0x1e8   :  { %v2093_v24 = vpop.f32.mrf.mxu1 }
 0x1e9   :  { %v1863_v26 = vpack.c.bf16 %v500_v22, %v499_v21  ;;  %v498_v27 = vmax.f32 %v450_v23, 0.0  ;;  %v471_v30 = vadd.f32 %v2093_v24, %v1720_v0 }
 0x1ea   :  { %v462_v28 = vpop.f32.mrf.mxu1  ;;  %v2265_v62 = vld [vmem:[#allocation2 + $0x8] sm:$0xff]  }
 0x1eb   :  { %1927 = vst [vmem:[#allocation2 + $0x18] sm:$0xff] %v1863_v26   ;;  %v1858_v29 = vpack.c.bf16 %v498_v27, %v497_v25  ;;  %v463_v32 = vadd.f32 %v1720_v0, %v462_v28  ;;  %v503_v35 = vmax.f32 %v471_v30, 0.0 }
 0x1ec   :  { %v2094_v31 = vpop.f32.mrf.mxu1  ;;  %v2266_v63 = vld [vmem:[#allocation2] sm:$0xff]  }
 0x1ed   :  { %1926 = vst [vmem:[#allocation2 + $0x10] sm:$0xff] %v1858_v29   ;;  %v474_v33 = vadd.f32 %v2094_v31, %v1720_v0  ;;  %v501_v39 = vmax.f32 %v463_v32, 0.0 }
 0x1ee   :  { %v465_v34 = vpop.f32.mrf.mxu1 }
 0x1ef   :  { %v504_v36 = vmax.f32 %v474_v33, 0.0  ;;  %v466_v37 = vadd.f32 %v1720_v0, %v465_v34  ;;  %v2291_v33 = vld [vmem:[#allocation3] sm:$0xff]   ;;  %v2299_v34 = vld [vmem:[#allocation8 + $0xb8] sm:$0xff]  }
 0x1f0   :  { %v2097_v38 = vpop.f32.mrf.mxu1  ;;  %2195 = vmatprep.subr.bf16.mxu1 %v2299_v34 }
 0x1f1   :  { %v1873_v40 = vpack.c.bf16 %v504_v36, %v503_v35  ;;  %v502_v41 = vmax.f32 %v466_v37, 0.0  ;;  %v487_v44 = vadd.f32 %v2097_v38, %v1720_v0  ;;  %v2300_v35 = vld [vmem:[#allocation8 + $0xb0] sm:$0xff]   ;;  %v2301_v36 = vld [vmem:[#allocation8 + $0xa8] sm:$0xff]   ;;  %v2302_v37 = vld [vmem:[#allocation8 + $0xa0] sm:$0xff]  }
 0x1f2   :  { %v478_v42 = vpop.f32.mrf.mxu1  ;;  %v2263_v60 = vld [vmem:[#allocation2 + $0x18] sm:$0xff]  }
 0x1f3   :  { %1929 = vst [vmem:[#allocation2 + $0x28] sm:$0xff] %v1873_v40   ;;  %v1868_v43 = vpack.c.bf16 %v502_v41, %v501_v39  ;;  %v479_v46 = vadd.f32 %v1720_v0, %v478_v42  ;;  %v507_v49 = vmax.f32 %v487_v44, 0.0  ;;  %v2303_v38 = vld [vmem:[#allocation8 + $0x98] sm:$0xff]   ;;  %v2304_v39 = vld [vmem:[#allocation8 + $0x90] sm:$0xff]   ;;  %v1762_v41 = vld [vmem:[%s2637_s3 + $0x1] ss:$0 sm:$0xff] }
 0x1f4   :  { %v2098_v45 = vpop.f32.mrf.mxu1  ;;  %v2264_v61 = vld [vmem:[#allocation2 + $0x10] sm:$0xff]  }
 0x1f5   :  { %1928 = vst [vmem:[#allocation2 + $0x20] sm:$0xff] %v1868_v43   ;;  %v490_v47 = vadd.f32 %v2098_v45, %v1720_v0  ;;  %v505_v52 = vmax.f32 %v479_v46, 0.0 }
 0x1f6   :  { %v481_v48 = vpop.f32.mrf.mxu1 }
 0x1f7   :  { %v508_v50 = vmax.f32 %v490_v47, 0.0  ;;  %v482_v51 = vadd.f32 %v1720_v0, %v481_v48  ;;  %v2268_v0 = vld [vmem:[#allocation3 + $0x8] sm:$0xff]  }
 0x1f9   :  { %v1883_v53 = vpack.c.bf16 %v508_v50, %v507_v49  ;;  %v506_v54 = vmax.f32 %v482_v51, 0.0 }
 0x1fa   :  { %v2261_v58 = vld [vmem:[#allocation2 + $0x28] sm:$0xff]  }
 0x1fb   :  { %1931 = vst [vmem:[#allocation2 + $0x38] sm:$0xff] %v1883_v53   ;;  %v1878_v55 = vpack.c.bf16 %v506_v54, %v505_v52 }
 0x1fc   :  { %v2262_v59 = vld [vmem:[#allocation2 + $0x20] sm:$0xff]  }
 0x1fd   :  { %1930 = vst [vmem:[#allocation2 + $0x30] sm:$0xff] %v1878_v55  }
 0x202   :  { %v2259_v56 = vld [vmem:[#allocation2 + $0x38] sm:$0xff]  }
 0x203   :  { %2099 = vmatprep.subr.bf16.mxu0 %v2259_v56 }
 0x204   :  { %v2260_v57 = vld [vmem:[#allocation2 + $0x30] sm:$0xff]   ;;  %2100 = vmatpush3.bf16.msra.mxu0 %v2259_v56 }
 0x205   :  { %2101 = vmatprep.subr.bf16.mxu0 %v2260_v57 }
 0x208   :  { %2102 = vmatpush3.bf16.msra.mxu0 %v2260_v57 }
 0x209   :  { %2103 = vmatprep.subr.bf16.mxu0 %v2261_v58 }
 0x20c   :  { %2104 = vmatpush3.bf16.msra.mxu0 %v2261_v58 }
 0x20d   :  { %2105 = vmatprep.subr.bf16.mxu0 %v2262_v59 }
 0x210   :  { %2106 = vmatpush3.bf16.msra.mxu0 %v2262_v59 }
 0x211   :  { %2107 = vmatprep.subr.bf16.mxu0 %v2263_v60 }
 0x214   :  { %2108 = vmatpush3.bf16.msra.mxu0 %v2263_v60 }
 0x215   :  { %2109 = vmatprep.subr.bf16.mxu0 %v2264_v61 }
 0x218   :  { %2110 = vmatpush3.bf16.msra.mxu0 %v2264_v61 }
 0x219   :  { %2111 = vmatprep.subr.bf16.mxu0 %v2265_v62 }
 0x21c   :  { %2112 = vmatpush3.bf16.msra.mxu0 %v2265_v62 }
 0x21d   :  { %2113 = vmatprep.subr.bf16.mxu0 %v2266_v63 }
 0x220   :  { %2114 = vmatpush3.bf16.msra.mxu0 %v2266_v63 }
 0x223   :  { %2116 = vmatmul.mubr.bf16.vlgmr.msra.gmra.mxu0 %v2268_v0 }
 0x224   :  { %2119 = vmatprep.mubr.bf16.mxu0 %v2269_v1 }
 0x22b   :  { %2120 = vmatmul.mubr.bf16.gmra.mxu0 %v2270_v2 }
 0x22c   :  { %2123 = vmatprep.mubr.bf16.mxu0 %v2271_v3 }
 0x233   :  { %2124 = vmatmul.mubr.bf16.gmra.mxu0 %v2272_v4 }
 0x234   :  { %2127 = vmatprep.mubr.bf16.mxu0 %v2273_v5 }
 0x23b   :  { %2128 = vmatmul.mubr.bf16.gmra.mxu0 %v2274_v6 }
 0x23c   :  { %2179 = vmatprep.mubr.bf16.mxu0 %v2291_v33 }
 0x2e3   :  { %v2117_v9 = vpop.f32.mrf.mxu0 }
 0x2e5   :  { %v751_v10 = vpop.f32.mrf.mxu0 }
 0x2e7   :  { %v2118_v11 = vpop.f32.mrf.mxu0 }
 0x2e8   :  { %v815_v14 = vpack.c.bf16 %v2118_v11, %v2117_v9 }
 0x2e9   :  { %v754_v12 = vpop.f32.mrf.mxu0 }
 0x2ea   :  { %v814_v13 = vpack.c.bf16 %v754_v12, %v751_v10 }
 0x2eb   :  { %v2121_v15 = vpop.f32.mrf.mxu0 }
 0x2ec   :  { %2147 = vmatprep.mubr.bf16.mxu1 %v814_v13 }
 0x2ed   :  { %v767_v16 = vpop.f32.mrf.mxu0  ;;  %2148 = vmatmul.mubr.bf16.vlgmr.msra.gmra.mxu1 %v815_v14 }
 0x2ee   :  { %2196 = vmatpush3.bf16.msra.mxu1 %v2299_v34 }
 0x2ef   :  { %v2122_v17 = vpop.f32.mrf.mxu0  ;;  %2197 = vmatprep.subr.bf16.mxu1 %v2300_v35 }
 0x2f0   :  { %v817_v20 = vpack.c.bf16 %v2122_v17, %v2121_v15 }
 0x2f1   :  { %v770_v18 = vpop.f32.mrf.mxu0 }
 0x2f2   :  { %v816_v19 = vpack.c.bf16 %v770_v18, %v767_v16  ;;  %2198 = vmatpush3.bf16.msra.mxu1 %v2300_v35 }
 0x2f3   :  { %v2125_v21 = vpop.f32.mrf.mxu0  ;;  %2199 = vmatprep.subr.bf16.mxu1 %v2301_v36 }
 0x2f4   :  { %2151 = vmatprep.mubr.bf16.mxu1 %v816_v19 }
 0x2f5   :  { %v783_v22 = vpop.f32.mrf.mxu0  ;;  %2152 = vmatmul.mubr.bf16.gmra.mxu1 %v817_v20 }
 0x2f6   :  { %2200 = vmatpush3.bf16.msra.mxu1 %v2301_v36 }
 0x2f7   :  { %v2126_v23 = vpop.f32.mrf.mxu0  ;;  %2201 = vmatprep.subr.bf16.mxu1 %v2302_v37 }
 0x2f8   :  { %v819_v26 = vpack.c.bf16 %v2126_v23, %v2125_v21 }
 0x2f9   :  { %v786_v24 = vpop.f32.mrf.mxu0 }
 0x2fa   :  { %v818_v25 = vpack.c.bf16 %v786_v24, %v783_v22  ;;  %2202 = vmatpush3.bf16.msra.mxu1 %v2302_v37 }
 0x2fb   :  { %v2129_v27 = vpop.f32.mrf.mxu0  ;;  %2203 = vmatprep.subr.bf16.mxu1 %v2303_v38 }
 0x2fc   :  { %2155 = vmatprep.mubr.bf16.mxu1 %v818_v25 }
 0x2fd   :  { %v799_v28 = vpop.f32.mrf.mxu0  ;;  %2156 = vmatmul.mubr.bf16.gmra.mxu1 %v819_v26 }
 0x2fe   :  { %2204 = vmatpush3.bf16.msra.mxu1 %v2303_v38 }
 0x2ff   :  { %v2130_v29 = vpop.f32.mrf.mxu0  ;;  %2205 = vmatprep.subr.bf16.mxu1 %v2304_v39 }
 0x300   :  { %v821_v32 = vpack.c.bf16 %v2130_v29, %v2129_v27 }
 0x301   :  { %v802_v30 = vpop.f32.mrf.mxu0 }
 0x302   :  { %v820_v31 = vpack.c.bf16 %v802_v30, %v799_v28  ;;  %2206 = vmatpush3.bf16.msra.mxu1 %v2304_v39 }
 0x304   :  { %2159 = vmatprep.mubr.bf16.mxu1 %v820_v31 }
 0x305   :  { %2160 = vmatmul.mubr.bf16.gmra.mxu1 %v821_v32 }
 0x3ad   :  { %v2149_v40 = vpop.f32.mrf.mxu1 }
 0x3ae   :  { %v938_v43 = vadd.f32 %v2149_v40, %v1762_v41 }
 0x3af   :  { %v929_v42 = vpop.f32.mrf.mxu1 }
 0x3b0   :  { %v930_v45 = vadd.f32 %v1762_v41, %v929_v42  ;;  %v994_v48 = vmax.f32 %v938_v43, 0.0  ;;  %v2293_v42 = vld [vmem:[#allocation3 + $0x10] sm:$0xff]   ;;  %v2294_v43 = vld [vmem:[#allocation3 + $0x18] sm:$0xff]  }
 0x3b1   :  { %v2150_v44 = vpop.f32.mrf.mxu1 }
 0x3b2   :  { %v941_v46 = vadd.f32 %v2150_v44, %v1762_v41  ;;  %v992_v52 = vmax.f32 %v930_v45, 0.0  ;;  %v2295_v44 = vld [vmem:[#allocation3 + $0x20] sm:$0xff]   ;;  %v2296_v45 = vld [vmem:[#allocation3 + $0x28] sm:$0xff]  }
 0x3b3   :  { %v932_v47 = vpop.f32.mrf.mxu1 }
 0x3b4   :  { %v995_v49 = vmax.f32 %v941_v46, 0.0  ;;  %v933_v50 = vadd.f32 %v1762_v41, %v932_v47  ;;  %v2297_v46 = vld [vmem:[#allocation3 + $0x30] sm:$0xff]   ;;  %v2298_v47 = vld [vmem:[#allocation3 + $0x38] sm:$0xff]  }
 0x3b5   :  { %v2153_v51 = vpop.f32.mrf.mxu1 }
 0x3b6   :  { %v1893_v53 = vpack.c.bf16 %v995_v49, %v994_v48  ;;  %v993_v54 = vmax.f32 %v933_v50, 0.0  ;;  %v954_v57 = vadd.f32 %v2153_v51, %v1762_v41  ;;  %v2305_v48 = vld [vmem:[#allocation8 + $0x88] sm:$0xff]   ;;  %v2306_v49 = vld [vmem:[#allocation8 + $0x80] sm:$0xff]  }
 0x3b7   :  { %v945_v55 = vpop.f32.mrf.mxu1  ;;  %2207 = vmatprep.subr.bf16.mxu1 %v2305_v48 }
 0x3b8   :  { %1932 = vst [vmem:[#allocation2 + $0x8] sm:$0xff] %v1893_v53   ;;  %v1888_v56 = vpack.c.bf16 %v993_v54, %v992_v52  ;;  %v946_v59 = vadd.f32 %v1762_v41, %v945_v55  ;;  %v998_v62 = vmax.f32 %v954_v57, 0.0  ;;  %2208 = vmatpush3.bf16.msra.mxu1 %v2305_v48 }
 0x3b9   :  { %v2154_v58 = vpop.f32.mrf.mxu1  ;;  %2209 = vmatprep.subr.bf16.mxu1 %v2306_v49 }
 0x3ba   :  { %1889 = vst [vmem:[#allocation2] sm:$0xff] %v1888_v56   ;;  %v957_v60 = vadd.f32 %v2154_v58, %v1762_v41  ;;  %v996_v2 = vmax.f32 %v946_v59, 0.0 }
 0x3bb   :  { %v948_v61 = vpop.f32.mrf.mxu1 }
 0x3bc   :  { %v999_v63 = vmax.f32 %v957_v60, 0.0  ;;  %v949_v0 = vadd.f32 %v1762_v41, %v948_v61  ;;  %2210 = vmatpush3.bf16.msra.mxu1 %v2306_v49 }
 0x3bd   :  { %v2157_v1 = vpop.f32.mrf.mxu1 }
 0x3be   :  { %v1903_v3 = vpack.c.bf16 %v999_v63, %v998_v62  ;;  %v997_v4 = vmax.f32 %v949_v0, 0.0  ;;  %v970_v7 = vadd.f32 %v2157_v1, %v1762_v41 }
 0x3bf   :  { %v961_v5 = vpop.f32.mrf.mxu1  ;;  %v2289_v39 = vld [vmem:[#allocation2 + $0x8] sm:$0xff]  }
 0x3c0   :  { %1934 = vst [vmem:[#allocation2 + $0x18] sm:$0xff] %v1903_v3   ;;  %v1898_v6 = vpack.c.bf16 %v997_v4, %v996_v2  ;;  %v962_v9 = vadd.f32 %v1762_v41, %v961_v5  ;;  %v1002_v12 = vmax.f32 %v970_v7, 0.0 }
 0x3c1   :  { %v2158_v8 = vpop.f32.mrf.mxu1  ;;  %v2290_v40 = vld [vmem:[#allocation2] sm:$0xff]  }
 0x3c2   :  { %1933 = vst [vmem:[#allocation2 + $0x10] sm:$0xff] %v1898_v6   ;;  %v973_v10 = vadd.f32 %v2158_v8, %v1762_v41  ;;  %v1000_v16 = vmax.f32 %v962_v9, 0.0 }
 0x3c3   :  { %v964_v11 = vpop.f32.mrf.mxu1 }
 0x3c4   :  { %v1003_v13 = vmax.f32 %v973_v10, 0.0  ;;  %v965_v14 = vadd.f32 %v1762_v41, %v964_v11  ;;  %v1491_v10 = vlaneseq }
 0x3c5   :  { %v2161_v15 = vpop.f32.mrf.mxu1 }
 0x3c6   :  { %v1913_v17 = vpack.c.bf16 %v1003_v13, %v1002_v12  ;;  %v1001_v18 = vmax.f32 %v965_v14, 0.0  ;;  %v986_v21 = vadd.f32 %v2161_v15, %v1762_v41  ;;  %v2505_v11 = vand.u32 127, %v1491_v10  ;;  %v1804_v12 = vld [vmem:[%s2637_s3 + $0x2] ss:$0 sm:$0xff]  ;;  %s2462_s3 = smov [#allocation9]  }
 0x3c7   :  { %v977_v19 = vpop.f32.mrf.mxu1  ;;  %v2287_v37 = vld [vmem:[#allocation2 + $0x18] sm:$0xff]   ;;  %s1691_s9 = sshll.u32 %s2462_s3, 4  ;;  %s1692_s9 = int_to_ptr.vmem [resolvable:$true] %s1691_s9 }
 0x3c8   :  { %1936 = vst [vmem:[#allocation2 + $0x28] sm:$0xff] %v1913_v17   ;;  %v1908_v20 = vpack.c.bf16 %v1001_v18, %v1000_v16  ;;  %v978_v23 = vadd.f32 %v1762_v41, %v977_v19  ;;  %v1006_v26 = vmax.f32 %v986_v21, 0.0  ;;  %vm1493_vm0 = vcmp.lt.s32.totalorder %v2505_v11, 8  ;;  %s2431_s10 = scalar_lea.vmem %s1692_s9, 2048  ;;  %p2436_p2 = scmp.lt.s32.totalorder %s1692_s9, %s1692_s9 }
 0x3c9   :  { %v2162_v22 = vpop.f32.mrf.mxu1  ;;  %v2288_v38 = vld [vmem:[#allocation2 + $0x10] sm:$0xff]   ;;  %p2432_p1 = scmp.ne.s32.totalorder %s1692_s9, %s2431_s10  ;;  %p2437_p3 = scmp.lt.s32.totalorder %s2431_s10, %s2431_s10 }
 0x3ca   :  { %1935 = vst [vmem:[#allocation2 + $0x20] sm:$0xff] %v1908_v20   ;;  %v989_v24 = vadd.f32 %v2162_v22, %v1762_v41  ;;  %v1004_v29 = vmax.f32 %v978_v23, 0.0 }
 0x3cb   :  { %v980_v25 = vpop.f32.mrf.mxu1  ;;  %p2438_p4 = por %p2437_p3, %p2436_p2 }
 0x3cc   :  { %v1007_v27 = vmax.f32 %v989_v24, 0.0  ;;  %v981_v28 = vadd.f32 %v1762_v41, %v980_v25  ;;  %v2292_v41 = vld [vmem:[#allocation3 + $0x8] sm:$0xff]  }
 0x3cd   :  { %p2439_p5 = pnand %p2438_p4, %p2432_p1 }
 0x3ce   :  { %v1923_v30 = vpack.c.bf16 %v1007_v27, %v1006_v26  ;;  %v1005_v31 = vmax.f32 %v981_v28, 0.0 }
 0x3cf   :  { %v2285_v35 = vld [vmem:[#allocation2 + $0x28] sm:$0xff]  }
 0x3d0   :  { %1938 = vst [vmem:[#allocation2 + $0x38] sm:$0xff] %v1923_v30   ;;  %v1918_v32 = vpack.c.bf16 %v1005_v31, %v1004_v29 }
 0x3d1   :  { %v2286_v36 = vld [vmem:[#allocation2 + $0x20] sm:$0xff]  }
 0x3d2   :  { %1937 = vst [vmem:[#allocation2 + $0x30] sm:$0xff] %v1918_v32  }
 0x3d7   :  { %v2283_v33 = vld [vmem:[#allocation2 + $0x38] sm:$0xff]  }
 0x3d8   :  { %2163 = vmatprep.subr.bf16.mxu0 %v2283_v33 }
 0x3d9   :  { %v2284_v34 = vld [vmem:[#allocation2 + $0x30] sm:$0xff]   ;;  %2164 = vmatpush3.bf16.msra.mxu0 %v2283_v33 }
 0x3da   :  { %2165 = vmatprep.subr.bf16.mxu0 %v2284_v34 }
 0x3dd   :  { %2166 = vmatpush3.bf16.msra.mxu0 %v2284_v34 }
 0x3de   :  { %2167 = vmatprep.subr.bf16.mxu0 %v2285_v35 }
 0x3e1   :  { %2168 = vmatpush3.bf16.msra.mxu0 %v2285_v35 }
 0x3e2   :  { %2169 = vmatprep.subr.bf16.mxu0 %v2286_v36 }
 0x3e5   :  { %2170 = vmatpush3.bf16.msra.mxu0 %v2286_v36 }
 0x3e6   :  { %2171 = vmatprep.subr.bf16.mxu0 %v2287_v37 }
 0x3e9   :  { %2172 = vmatpush3.bf16.msra.mxu0 %v2287_v37 }
 0x3ea   :  { %2173 = vmatprep.subr.bf16.mxu0 %v2288_v38 }
 0x3ed   :  { %2174 = vmatpush3.bf16.msra.mxu0 %v2288_v38 }
 0x3ee   :  { %2175 = vmatprep.subr.bf16.mxu0 %v2289_v39 }
 0x3f1   :  { %2176 = vmatpush3.bf16.msra.mxu0 %v2289_v39 }
 0x3f2   :  { %2177 = vmatprep.subr.bf16.mxu0 %v2290_v40 }
 0x3f5   :  { %2178 = vmatpush3.bf16.msra.mxu0 %v2290_v40 }
 0x3f8   :  { %2180 = vmatmul.mubr.bf16.vlgmr.msra.gmra.mxu0 %v2292_v41 }
 0x3f9   :  { %2183 = vmatprep.mubr.bf16.mxu0 %v2293_v42 }
 0x400   :  { %2184 = vmatmul.mubr.bf16.gmra.mxu0 %v2294_v43 }
 0x401   :  { %2187 = vmatprep.mubr.bf16.mxu0 %v2295_v44 }
 0x408   :  { %2188 = vmatmul.mubr.bf16.gmra.mxu0 %v2296_v45 }
 0x409   :  { %2191 = vmatprep.mubr.bf16.mxu0 %v2297_v46 }
 0x410   :  { %2192 = vmatmul.mubr.bf16.gmra.mxu0 %v2298_v47 }
 0x4b8   :  { %v2181_v50 = vpop.f32.mrf.mxu0 }
 0x4ba   :  { %v1250_v51 = vpop.f32.mrf.mxu0 }
 0x4bc   :  { %v2182_v52 = vpop.f32.mrf.mxu0 }
 0x4bd   :  { %v1314_v55 = vpack.c.bf16 %v2182_v52, %v2181_v50 }
 0x4be   :  { %v1253_v53 = vpop.f32.mrf.mxu0 }
 0x4bf   :  { %v1313_v54 = vpack.c.bf16 %v1253_v53, %v1250_v51 }
 0x4c0   :  { %v2185_v56 = vpop.f32.mrf.mxu0 }
 0x4c1   :  { %2211 = vmatprep.mubr.bf16.mxu1 %v1313_v54 }
 0x4c2   :  { %v1266_v57 = vpop.f32.mrf.mxu0  ;;  %2212 = vmatmul.mubr.bf16.vlgmr.msra.gmra.mxu1 %v1314_v55 }
 0x4c4   :  { %v2186_v58 = vpop.f32.mrf.mxu0 }
 0x4c5   :  { %v1316_v61 = vpack.c.bf16 %v2186_v58, %v2185_v56 }
 0x4c6   :  { %v1269_v59 = vpop.f32.mrf.mxu0 }
 0x4c7   :  { %v1315_v60 = vpack.c.bf16 %v1269_v59, %v1266_v57 }
 0x4c8   :  { %v2189_v62 = vpop.f32.mrf.mxu0 }
 0x4c9   :  { %2215 = vmatprep.mubr.bf16.mxu1 %v1315_v60 }
 0x4ca   :  { %v1282_v63 = vpop.f32.mrf.mxu0  ;;  %2216 = vmatmul.mubr.bf16.gmra.mxu1 %v1316_v61 }
 0x4cc   :  { %v2190_v0 = vpop.f32.mrf.mxu0 }
 0x4cd   :  { %v1318_v3 = vpack.c.bf16 %v2190_v0, %v2189_v62 }
 0x4ce   :  { %v1285_v1 = vpop.f32.mrf.mxu0 }
 0x4cf   :  { %v1317_v2 = vpack.c.bf16 %v1285_v1, %v1282_v63 }
 0x4d0   :  { %v2193_v4 = vpop.f32.mrf.mxu0 }
 0x4d1   :  { %2219 = vmatprep.mubr.bf16.mxu1 %v1317_v2 }
 0x4d2   :  { %v1298_v5 = vpop.f32.mrf.mxu0  ;;  %2220 = vmatmul.mubr.bf16.gmra.mxu1 %v1318_v3 }
 0x4d4   :  { %v2194_v6 = vpop.f32.mrf.mxu0 }
 0x4d5   :  { %v1320_v9 = vpack.c.bf16 %v2194_v6, %v2193_v4 }
 0x4d6   :  { %v1301_v7 = vpop.f32.mrf.mxu0 }
 0x4d7   :  { %v1319_v8 = vpack.c.bf16 %v1301_v7, %v1298_v5 }
 0x4d9   :  { %2223 = vmatprep.mubr.bf16.mxu1 %v1319_v8 }
 0x4da   :  { %2224 = vmatmul.mubr.bf16.gmra.mxu1 %v1320_v9 }
 0x582   :  { %v2213_v13 = vpop.f32.mrf.mxu1 }
 0x583   :  { %v1437_v14 = vadd.f32 %v2213_v13, %v1804_v12 }
 0x584   :  { %v1428_v15 = vpop.f32.mrf.mxu1 }
 0x585   :  { %v1429_v16 = vadd.f32 %v1804_v12, %v1428_v15  ;;  %v1496_v17 = vsel %vm1493_vm0, %v1437_v14, -1e+30 }
 0x586   :  { %1514 = vmax.xlane.f32.xlu1 %v1496_v17  ;;  %v2214_v18 = vpop.f32.mrf.mxu1 }
 0x587   :  { %v1440_v19 = vadd.f32 %v2214_v18, %v1804_v12  ;;  %v1494_v20 = vsel %vm1493_vm0, %v1429_v16, -1e+30 }
 0x588   :  { %v1431_v21 = vpop.f32.mrf.mxu1  ;;  %1510 = vmax.xlane.f32.xlu0 %v1494_v20 }
 0x589   :  { %v1432_v22 = vadd.f32 %v1804_v12, %v1431_v21  ;;  %v1497_v23 = vsel %vm1493_vm0, %v1440_v19, -1e+30 }
 0x58a   :  { %1516 = vmax.xlane.f32.xlu1 %v1497_v23  ;;  %v2217_v24 = vpop.f32.mrf.mxu1 }
 0x58b   :  { %v1453_v25 = vadd.f32 %v2217_v24, %v1804_v12  ;;  %v1495_v26 = vsel %vm1493_vm0, %v1432_v22, -1e+30 }
 0x58c   :  { %1512 = vmax.xlane.f32.xlu0 %v1495_v26  ;;  %v1444_v27 = vpop.f32.mrf.mxu1 }
 0x58d   :  { %v1445_v29 = vadd.f32 %v1804_v12, %v1444_v27  ;;  %v1500_v31 = vsel %vm1493_vm0, %v1453_v25, -1e+30 }
 0x58e   :  { %v2218_v28 = vpop.f32.mrf.mxu1 }
 0x58f   :  { %v1456_v30 = vadd.f32 %v2218_v28, %v1804_v12  ;;  %v1498_v37 = vsel %vm1493_vm0, %v1445_v29, -1e+30 }
 0x590   :  { %1522 = vmax.xlane.f32.xlu0 %v1500_v31  ;;  %v1447_v32 = vpop.f32.mrf.mxu1 }
 0x591   :  { %v1448_v33 = vadd.f32 %v1804_v12, %v1447_v32  ;;  %v1501_v34 = vsel %vm1493_vm0, %v1456_v30, -1e+30 }
 0x592   :  { %1524 = vmax.xlane.f32.xlu1 %v1501_v34  ;;  %v2221_v35 = vpop.f32.mrf.mxu1 }
 0x593   :  { %v1469_v36 = vadd.f32 %v2221_v35, %v1804_v12  ;;  %v1499_v39 = vsel %vm1493_vm0, %v1448_v33, -1e+30 }
 0x594   :  { %1518 = vmax.xlane.f32.xlu0 %v1498_v37  ;;  %v1460_v38 = vpop.f32.mrf.mxu1 }
 0x595   :  { %v1461_v41 = vadd.f32 %v1804_v12, %v1460_v38  ;;  %v1504_v43 = vsel %vm1493_vm0, %v1469_v36, -1e+30 }
 0x596   :  { %1520 = vmax.xlane.f32.xlu1 %v1499_v39  ;;  %v2222_v40 = vpop.f32.mrf.mxu1 }
 0x597   :  { %v1472_v42 = vadd.f32 %v2222_v40, %v1804_v12  ;;  %v2533_v48 = vsel %vm1493_vm0, %v1461_v41, -1e+30 }
 0x598   :  { %1530 = vmax.xlane.f32.xlu0 %v1504_v43  ;;  %v1463_v44 = vpop.f32.mrf.mxu1 }
 0x599   :  { %v1464_v45 = vadd.f32 %v1804_v12, %v1463_v44  ;;  %v1505_v46 = vsel %vm1493_vm0, %v1472_v42, -1e+30 }
 0x59a   :  { %1532 = vmax.xlane.f32.xlu1 %v1505_v46  ;;  %v2225_v47 = vpop.f32.mrf.mxu1 }
 0x59b   :  { %v2538_v51 = vsel %vm1493_vm0, %v1464_v45, -1e+30  ;;  %v1485_v53 = vadd.f32 %v2225_v47, %v1804_v12 }
 0x59c   :  { %1526 = vmax.xlane.f32.xlu0 %v2533_v48  ;;  %v1476_v49 = vpop.f32.mrf.mxu1 }
 0x59d   :  { %v1477_v50 = vadd.f32 %v1804_v12, %v1476_v49  ;;  %v2552_v59 = vsel %vm1493_vm0, %v1485_v53, -1e+30 }
 0x59e   :  { %1528 = vmax.xlane.f32.xlu1 %v2538_v51  ;;  %v2226_v52 = vpop.f32.mrf.mxu1 }
 0x59f   :  { %v2543_v54 = vsel %vm1493_vm0, %v1477_v50, -1e+30  ;;  %v1488_v57 = vadd.f32 %v2226_v52, %v1804_v12 }
 0x5a0   :  { %v1479_v55 = vpop.f32.mrf.mxu1  ;;  %1534 = vmax.xlane.f32.xlu0 %v2543_v54 }
 0x5a1   :  { %v1480_v56 = vadd.f32 %v1804_v12, %v1479_v55  ;;  %v2558_v60 = vsel %vm1493_vm0, %v1488_v57, -1e+30 }
 0x5a3   :  { %v2548_v58 = vsel %vm1493_vm0, %v1480_v56, -1e+30 }
 0x5a4   :  { %1536 = vmax.xlane.f32.xlu1 %v2548_v58  ;;  %1538 = vmax.xlane.f32.xlu0 %v2552_v59 }
 0x5a8   :  { %1540 = vmax.xlane.f32.xlu1 %v2558_v60 }
 0x60f   :  { %v1515_v61 = vpop.xlane.xlu1 %1514 }
 0x610   :  { %v2561_v62 = vsub.f32 %v1496_v17, %v1515_v61 }
 0x611   :  { %v1511_v63 = vpop.xlane.xlu0 %1510 }
 0x612   :  { %v1562_v0 = vmul.f32 1.442695, %v2561_v62  ;;  %v2564_v1 = vsub.f32 %v1494_v20, %v1511_v63 }
 0x613   :  { %v1517_v2 = vpop.xlane.xlu1 %1516 }
 0x614   :  { %2307 = vpow2.f32 %v1562_v0  ;;  %v1558_v3 = vmul.f32 1.442695, %v2564_v1  ;;  %v2567_v4 = vsub.f32 %v1497_v23, %v1517_v2 }
 0x615   :  { %v1513_v5 = vpop.xlane.xlu0 %1512 }
 0x616   :  { %v1564_v6 = vmul.f32 1.442695, %v2567_v4  ;;  %v2570_v7 = vsub.f32 %v1495_v26, %v1513_v5  ;;  %2309 = vpow2.f32 %v1558_v3 }
 0x618   :  { %2311 = vpow2.f32 %v1564_v6  ;;  %v1560_v8 = vmul.f32 1.442695, %v2570_v7 }
 0x619   :  { %v1523_v9 = vpop.xlane.xlu0 %1522 }
 0x61a   :  { %v2573_v10 = vsub.f32 %v1500_v31, %v1523_v9  ;;  %2313 = vpow2.f32 %v1560_v8 }
 0x61b   :  { %v1525_v11 = vpop.xlane.xlu1 %1524 }
 0x61c   :  { %v1570_v12 = vmul.f32 1.442695, %v2573_v10  ;;  %v2576_v13 = vsub.f32 %v1501_v34, %v1525_v11 }
 0x61d   :  { %v1519_v14 = vpop.xlane.xlu0 %1518 }
 0x61e   :  { %2315 = vpow2.f32 %v1570_v12  ;;  %v1572_v15 = vmul.f32 1.442695, %v2576_v13  ;;  %v2579_v16 = vsub.f32 %v1498_v37, %v1519_v14 }
 0x61f   :  { %v1521_v17 = vpop.xlane.xlu1 %1520 }
 0x620   :  { %2317 = vpow2.f32 %v1572_v15  ;;  %v1566_v18 = vmul.f32 1.442695, %v2579_v16  ;;  %v2582_v19 = vsub.f32 %v1499_v39, %v1521_v17 }
 0x621   :  { %v2308_v20 = vpop.eup %2307  ;;  %v1531_v21 = vpop.xlane.xlu0 %1530 }
 0x622   :  { %2319 = vpow2.f32 %v1566_v18  ;;  %v1568_v22 = vmul.f32 1.442695, %v2582_v19  ;;  %v2585_v23 = vsub.f32 %v1504_v43, %v1531_v21  ;;  %1594 = vadd.xlane.f32.xlu0 %v2308_v20 }
 0x623   :  { %v1533_v24 = vpop.xlane.xlu1 %1532  ;;  %v2310_v25 = vpop.eup %2309 }
 0x624   :  { %2321 = vpow2.f32 %v1568_v22  ;;  %v1578_v26 = vmul.f32 1.442695, %v2585_v23  ;;  %v2588_v27 = vsub.f32 %v1505_v46, %v1533_v24 }
 0x625   :  { %v2312_v28 = vpop.eup %2311  ;;  %v1527_v29 = vpop.xlane.xlu0 %1526 }
 0x626   :  { %2323 = vpow2.f32 %v1578_v26  ;;  %v1580_v30 = vmul.f32 1.442695, %v2588_v27  ;;  %v2592_v31 = vsub.f32 %v2533_v48, %v1527_v29  ;;  %1596 = vadd.xlane.f32.xlu1 %v2312_v28  ;;  %1590 = vadd.xlane.f32.xlu0 %v2310_v25 }
 0x627   :  { %v1529_v32 = vpop.xlane.xlu1 %1528  ;;  %v2314_v35 = vpop.eup %2313 }
 0x628   :  { %2325 = vpow2.f32 %v1580_v30  ;;  %v1574_v33 = vmul.f32 1.442695, %v2592_v31  ;;  %v2596_v34 = vsub.f32 %v2538_v51, %v1529_v32 }
 0x629   :  { %v1535_v36 = vpop.xlane.xlu0 %1534 }
 0x62a   :  { %2327 = vpow2.f32 %v1574_v33  ;;  %v1576_v37 = vmul.f32 1.442695, %v2596_v34  ;;  %v2600_v38 = vsub.f32 %v2543_v54, %v1535_v36  ;;  %1592 = vadd.xlane.f32.xlu1 %v2314_v35 }
 0x62b   :  { %v2316_v39 = vpop.eup %2315 }
 0x62c   :  { %2329 = vpow2.f32 %v1576_v37  ;;  %v1582_v40 = vmul.f32 1.442695, %v2600_v38  ;;  %1602 = vadd.xlane.f32.xlu0 %v2316_v39 }
 0x62d   :  { %v2318_v41 = vpop.eup %2317  ;;  %v1537_v42 = vpop.xlane.xlu1 %1536 }
 0x62e   :  { %v1539_v43 = vpop.xlane.xlu0 %1538  ;;  %2331 = vpow2.f32 %v1582_v40  ;;  %v2604_v44 = vsub.f32 %v2548_v58, %v1537_v42  ;;  %1604 = vadd.xlane.f32.xlu1 %v2318_v41 }
 0x62f   :  { %v2607_v45 = vsub.f32 %v2552_v59, %v1539_v43  ;;  %v2320_v46 = vpop.eup %2319 }
 0x630   :  { %v1584_v47 = vmul.f32 1.442695, %v2604_v44  ;;  %1598 = vadd.xlane.f32.xlu0 %v2320_v46 }
 0x631   :  { %v1586_v48 = vmul.f32 1.442695, %v2607_v45  ;;  %v2322_v49 = vpop.eup %2321  ;;  %v1541_v50 = vpop.xlane.xlu1 %1540 }
 0x632   :  { %2333 = vpow2.f32 %v1584_v47  ;;  %v2612_v51 = vsub.f32 %v2558_v60, %v1541_v50  ;;  %1600 = vadd.xlane.f32.xlu1 %v2322_v49 }
 0x633   :  { %v2324_v52 = vpop.eup %2323  ;;  %2335 = vpow2.f32 %v1586_v48 }
 0x634   :  { %v1588_v53 = vmul.f32 1.442695, %v2612_v51  ;;  %1610 = vadd.xlane.f32.xlu0 %v2324_v52 }
 0x635   :  { %v2326_v54 = vpop.eup %2325 }
 0x636   :  { %2337 = vpow2.f32 %v1588_v53  ;;  %1612 = vadd.xlane.f32.xlu1 %v2326_v54 }
 0x637   :  { %v2328_v55 = vpop.eup %2327 }
 0x638   :  { %1606 = vadd.xlane.f32.xlu0 %v2328_v55 }
 0x639   :  { %v2330_v56 = vpop.eup %2329 }
 0x63a   :  { %1608 = vadd.xlane.f32.xlu1 %v2330_v56 }
 0x63b   :  { %v2332_v57 = vpop.eup %2331 }
 0x63c   :  { %1614 = vadd.xlane.f32.xlu0 %v2332_v57 }
 0x63f   :  { %v2334_v58 = vpop.eup %2333 }
 0x640   :  { %v2336_v59 = vpop.eup %2335  ;;  %1616 = vadd.xlane.f32.xlu1 %v2334_v58 }
 0x641   :  { %1618 = vadd.xlane.f32.xlu0 %v2336_v59 }
 0x643   :  { %v2338_v60 = vpop.eup %2337 }
 0x644   :  { %1620 = vadd.xlane.f32.xlu1 %v2338_v60 }
 0x6ab   :  { %v1595_v61 = vpop.xlane.xlu0 %1594 }
 0x6ac   :  { %2339 = vlog2.f32 %v1595_v61 }
 0x6af   :  { %v1597_v63 = vpop.xlane.xlu1 %1596  ;;  %v1591_v0 = vpop.xlane.xlu0 %1590 }
 0x6b0   :  { %2341 = vlog2.f32 %v1597_v63 }
 0x6b1   :  { %2343 = vlog2.f32 %v1591_v0 }
 0x6b3   :  { %v1593_v2 = vpop.xlane.xlu1 %1592 }
 0x6b4   :  { %2345 = vlog2.f32 %v1593_v2 }
 0x6b5   :  { %v1603_v3 = vpop.xlane.xlu0 %1602 }
 0x6b6   :  { %2347 = vlog2.f32 %v1603_v3 }
 0x6b7   :  { %v1605_v5 = vpop.xlane.xlu1 %1604 }
 0x6b8   :  { %2349 = vlog2.f32 %v1605_v5 }
 0x6b9   :  { %v2340_v6 = vpop.eup %2339  ;;  %v1599_v8 = vpop.xlane.xlu0 %1598 }
 0x6ba   :  { %v1627_v9 = vmul.f32 0.6931472, %v2340_v6  ;;  %2351 = vlog2.f32 %v1599_v8 }
 0x6bb   :  { %v1601_v11 = vpop.xlane.xlu1 %1600 }
 0x6bc   :  { %v1656_v12 = vsub.f32 %v2561_v62, %v1627_v9  ;;  %2353 = vlog2.f32 %v1601_v11 }
 0x6bd   :  { %v2342_v14 = vpop.eup %2341  ;;  %v1611_v15 = vpop.xlane.xlu0 %1610 }
 0x6be   :  { %v2344_v17 = vpop.eup %2343  ;;  %1672 = vst [vmem:[#allocation9 + $0x10] sm:$0xff] %v1656_v12  ;;  %v1629_v18 = vmul.f32 0.6931472, %v2342_v14  ;;  %2355 = vlog2.f32 %v1611_v15 }
 0x6bf   :  { %v1623_v20 = vmul.f32 0.6931472, %v2344_v17  ;;  %v1613_v21 = vpop.xlane.xlu1 %1612 }
 0x6c0   :  { %v1657_v22 = vsub.f32 %v2567_v4, %v1629_v18  ;;  %2357 = vlog2.f32 %v1613_v21 }
 0x6c1   :  { %v2346_v24 = vpop.eup %2345  ;;  %v1654_v25 = vsub.f32 %v2564_v1, %v1623_v20  ;;  %v1607_v26 = vpop.xlane.xlu0 %1606 }
 0x6c2   :  { %1673 = vst [vmem:[#allocation9 + $0x18] sm:$0xff] %v1657_v22  ;;  %v1625_v28 = vmul.f32 0.6931472, %v2346_v24  ;;  %2359 = vlog2.f32 %v1607_v26 }
 0x6c3   :  { %v2348_v62 = vpop.eup %2347  ;;  %1670 = vst [vmem:[#allocation9] sm:$0xff] %v1654_v25  ;;  %v1609_v29 = vpop.xlane.xlu1 %1608 }
 0x6c4   :  { %v1655_v30 = vsub.f32 %v2570_v7, %v1625_v28  ;;  %v1635_v32 = vmul.f32 0.6931472, %v2348_v62  ;;  %2361 = vlog2.f32 %v1609_v29 }
 0x6c5   :  { %v2350_v33 = vpop.eup %2349  ;;  %v1615_v35 = vpop.xlane.xlu0 %1614 }
 0x6c6   :  { %1671 = vst [vmem:[#allocation9 + $0x8] sm:$0xff] %v1655_v30  ;;  %v1660_v4 = vsub.f32 %v2573_v10, %v1635_v32  ;;  %v1637_v36 = vmul.f32 0.6931472, %v2350_v33  ;;  %2363 = vlog2.f32 %v1615_v35 }
 0x6c7   :  { %v2352_v37 = vpop.eup %2351 }
 0x6c8   :  { %1676 = vst [vmem:[#allocation9 + $0x30] sm:$0xff] %v1660_v4  ;;  %v1661_v1 = vsub.f32 %v2576_v13, %v1637_v36  ;;  %v1631_v39 = vmul.f32 0.6931472, %v2352_v37 }
 0x6c9   :  { %v2354_v40 = vpop.eup %2353  ;;  %v1617_v41 = vpop.xlane.xlu1 %1616 }
 0x6ca   :  { %1677 = vst [vmem:[#allocation9 + $0x38] sm:$0xff] %v1661_v1  ;;  %v1658_v42 = vsub.f32 %v2579_v16, %v1631_v39  ;;  %v1633_v7 = vmul.f32 0.6931472, %v2354_v40  ;;  %2365 = vlog2.f32 %v1617_v41  ;;  %v1619_v43 = vpop.xlane.xlu0 %1618 }
 0x6cb   :  { %v2356_v46 = vpop.eup %2355  ;;  %2367 = vlog2.f32 %v1619_v43 }
 0x6cc   :  { %1674 = vst [vmem:[#allocation9 + $0x20] sm:$0xff] %v1658_v42  ;;  %v1659_v10 = vsub.f32 %v2582_v19, %v1633_v7  ;;  %v1643_v47 = vmul.f32 0.6931472, %v2356_v46 }
 0x6cd   :  { %v2358_v48 = vpop.eup %2357  ;;  %v1621_v49 = vpop.xlane.xlu1 %1620 }
 0x6ce   :  { %1675 = vst [vmem:[#allocation9 + $0x28] sm:$0xff] %v1659_v10  ;;  %v1664_v13 = vsub.f32 %v2585_v23, %v1643_v47  ;;  %v1645_v50 = vmul.f32 0.6931472, %v2358_v48  ;;  %2369 = vlog2.f32 %v1621_v49 }
 0x6cf   :  { %v2360_v52 = vpop.eup %2359 }
 0x6d0   :  { %1680 = vst [vmem:[#allocation9 + $0x50] sm:$0xff] %v1664_v13  ;;  %v1665_v16 = vsub.f32 %v2588_v27, %v1645_v50  ;;  %v1639_v53 = vmul.f32 0.6931472, %v2360_v52 }
 0x6d1   :  { %v2362_v54 = vpop.eup %2361 }
 0x6d2   :  { %1681 = vst [vmem:[#allocation9 + $0x58] sm:$0xff] %v1665_v16  ;;  %v1662_v55 = vsub.f32 %v2592_v31, %v1639_v53  ;;  %v1641_v56 = vmul.f32 0.6931472, %v2362_v54 }
 0x6d3   :  { %v2364_v57 = vpop.eup %2363 }
 0x6d4   :  { %1678 = vst [vmem:[#allocation9 + $0x40] sm:$0xff] %v1662_v55  ;;  %v1663_v19 = vsub.f32 %v2596_v34, %v1641_v56  ;;  %v1647_v58 = vmul.f32 0.6931472, %v2364_v57 }
 0x6d6   :  { %1679 = vst [vmem:[#allocation9 + $0x48] sm:$0xff] %v1663_v19  ;;  %v1666_v23 = vsub.f32 %v2600_v38, %v1647_v58 }
 0x6d7   :  { %v2366_v59 = vpop.eup %2365 }
 0x6d8   :  { %v2368_v60 = vpop.eup %2367  ;;  %1682 = vst [vmem:[#allocation9 + $0x60] sm:$0xff] %v1666_v23  ;;  %v1649_v61 = vmul.f32 0.6931472, %v2366_v59 }
 0x6d9   :  { %v1651_v63 = vmul.f32 0.6931472, %v2368_v60 }
 0x6da   :  { %v1667_v27 = vsub.f32 %v2604_v44, %v1649_v61 }
 0x6db   :  { %v2370_v0 = vpop.eup %2369  ;;  %v1668_v2 = vsub.f32 %v2607_v45, %v1651_v63 }
 0x6dc   :  { %1683 = vst [vmem:[#allocation9 + $0x68] sm:$0xff] %v1667_v27  ;;  %v1653_v31 = vmul.f32 0.6931472, %v2370_v0 }
 0x6dd   :  { %1684 = vst [vmem:[#allocation9 + $0x70] sm:$0xff] %v1668_v2 }
 0x6de   :  { %v1669_v34 = vsub.f32 %v2612_v51, %v1653_v31 }
 0x6e0   :  { %1685 = vst [vmem:[#allocation9 + $0x78] sm:$0xff] %v1669_v34 }
 0x6e1   :  { %2442 = shalt.err (!%p2439_p5)
}
 0x6e2   :  { %s2463_s11 = smov 128   ;;  %s2464_s12 = smov 8  }
 0x6e3   :  { %1697 = dma.vmem_to_hbm [thread:$0]  %s1692_s9, 2048, %s2638_s4, [#allocation5], %s2463_s11, %s2463_s11, %s2464_s12  }
 0x6e4   :  { %2455 = dma.done.wait [#allocation5], 2048  }
 0x6e5   :  { %2456 = vsyncadd [#allocation5], 4294965248 }
 0x6e6   :  { %1701 = vsyncpa [#allocation4], 1 }
 0x6e7   :  { %1702 = vsyncpa [#allocation7], 1 }
 0x6e8   :  { %1703 = vsyncpa [#allocation5], 1 }

</bundles_post_ra>
